<compile_context>
chip_gen: v6e
topology: v6e:2x2x1
jax: 0.10.0
libtpu: 0.0.40
codegen_flags: <defaults>
</compile_context>

<pallas_src>
import numpy as np
import jax
import jax.numpy as jnp
from jax.experimental import pallas as pl
from jax.experimental.pallas import tpu as pltpu

PAD_F = 32      # lane-padded feature width (>= every hidden dim: max is 20)
N_LAYERS = 5
LAYER_SIZES = [(2, 10), (10, 20), (20, 10), (10, 5), (5, 2)]  # (in, out) per Linear
MAX_TB = 256    # batch-block rows per grid step (for large batches)


def _mlp_kernel(v_ref, w_ref, b_ref, out_ref):
    """Whole MLP in one kernel: 5 MXU matmuls + VPU bias/ReLU + EUP exp.

    v_ref  : (TB, 32)      padded activations, lanes 0..1 real
    w_ref  : (5, 32, 32)   stacked padded W.T per layer (VMEM-resident)
    b_ref  : (8, 32)       bias row per layer (rows 0..4 used)
    out_ref: (TB, 32)      lane 0 = mean, lane 1 = std = exp(raw lane 1)
    """
    h = v_ref[...]
    # Four hidden layers with ReLU (static unroll).
    for i in range(N_LAYERS - 1):
        h = jnp.maximum(
            jnp.dot(h, w_ref[i], preferred_element_type=jnp.float32)
            + b_ref[pl.ds(i, 1), :],
            0.0,
        )
    # Final linear layer (no ReLU).
    h = (jnp.dot(h, w_ref[N_LAYERS - 1], preferred_element_type=jnp.float32)
         + b_ref[pl.ds(N_LAYERS - 1, 1), :])
    # std = exp(.) only on the std column (TB x 1 EUP pushes, not TB x 32).
    std_col = jnp.exp(h[:, 1:2])                                    # (TB, 1)
    lane = jax.lax.broadcasted_iota(jnp.int32, h.shape, 1)
    out_ref[...] = jnp.where(lane == 1, std_col, h)


def init_params(key):
    """Deterministic init matching PyTorch Linear shapes: W (out,in), b (out,)."""
    params = []
    for (fan_in, fan_out) in LAYER_SIZES:
        key, kw, kb = jax.random.split(key, 3)
        bound = 1.0 / np.sqrt(fan_in)
        w = jax.random.uniform(kw, (fan_out, fan_in), jnp.float32, -bound, bound)
        b = jax.random.uniform(kb, (fan_out,), jnp.float32, -bound, bound)
        params.append((w, b))
    return params


def pack_params(params):
    """One-time packing: pad/stack weights and biases into 2 kernel arrays."""
    w_stack = np.zeros((N_LAYERS, PAD_F, PAD_F), np.float32)
    b_stack = np.zeros((8, PAD_F), np.float32)
    for i, (w, b) in enumerate(params):
        w_np = np.asarray(w, np.float32)
        b_np = np.asarray(b, np.float32)
        # store W.T so the kernel computes x @ W.T + b
        w_stack[i, : w_np.shape[1], : w_np.shape[0]] = w_np.T
        b_stack[i, : b_np.shape[0]] = b_np
    return jnp.asarray(w_stack), jnp.asarray(b_stack)


@jax.jit
def _guide_impl(x1, x2, w_stack, b_stack):
    """Everything (stack / pad / kernel / extract / exp) in one XLA dispatch.

    x1, x2: scalars or 1-D batches (same length).  Returns (mean, std).
    """
    scalar_in = (jnp.ndim(x1) == 0)
    x1v = jnp.reshape(x1.astype(jnp.float32), (-1,))
    x2v = jnp.reshape(x2.astype(jnp.float32), (-1,))
    v = jnp.stack([x1v, x2v], axis=1)                    # (B, 2)
    B = v.shape[0]

    # Batch padding: multiple of 8 sublanes, then multiple of the batch block.
    pad_b = max(8, -(-B // 8) * 8)
    tb = MAX_TB if pad_b >= MAX_TB else pad_b
    pad_b = -(-pad_b // tb) * tb
    n_blocks = pad_b // tb

    v_pad = jnp.zeros((pad_b, PAD_F), jnp.float32).at[:B, :2].set(v)

    out = pl.pallas_call(
        _mlp_kernel,
        out_shape=jax.ShapeDtypeStruct((pad_b, PAD_F), jnp.float32),
        grid=(n_blocks,),
        in_specs=[
            pl.BlockSpec((tb, PAD_F), lambda i: (i, 0)),
            # Constant block index -> weights/biases stay VMEM-resident.
            pl.BlockSpec((N_LAYERS, PAD_F, PAD_F), lambda i: (0, 0, 0)),
            pl.BlockSpec((8, PAD_F), lambda i: (0, 0)),
        ],
        out_specs=pl.BlockSpec((tb, PAD_F), lambda i: (i, 0)),
        compiler_params=pltpu.CompilerParams(
            dimension_semantics=("parallel",)),   # v7x: split batch across 2 TCs
    )(v_pad, w_stack, b_stack)

    mean = out[:B, 0]
    std = out[:B, 1]
    if scalar_in:
        return mean[0], std[0]
    return mean, std


def guide_forward(x1, x2, packed):
    """Returns (mean, std) of the guide's Normal over latent z.

    x1, x2 may be scalars (module semantics) or 1-D batches of observations.
    """
    w_stack, b_stack = packed
    return _guide_impl(jnp.asarray(x1), jnp.asarray(x2), w_stack, b_stack)


def guide_forward_ref(x1, x2, params):
    """Pure-JAX reference for correctness checking (batched)."""
    x1v = jnp.reshape(jnp.asarray(x1, jnp.float32), (-1,))
    x2v = jnp.reshape(jnp.asarray(x2, jnp.float32), (-1,))
    h = jnp.stack([x1v, x2v], axis=1)
    for i, (w, b) in enumerate(params):
        h = h @ w.T + b
        if i < len(params) - 1:
            h = jnp.maximum(h, 0.0)
    return h[:, 0], jnp.exp(h[:, 1])


if __name__ == "__main__":
    key = jax.random.PRNGKey(0)
    pkey, xkey, bkey, gkey, zkey = jax.random.split(key, 5)

    params = init_params(pkey)
    packed = pack_params(params)  # one-time padding / stacking

    # --- single observation pair (matches the module's (1,2) input) ---
    obs = jax.random.normal(xkey, (2,), jnp.float32)
    x1, x2 = obs[0], obs[1]
    prior_mean = jnp.float32(1.0)  # unused by the network, kept for signature parity

    mean, std = guide_forward(x1, x2, packed)
    mean, std = jax.block_until_ready((mean, std))

    # pyro.sample('z', dist.Normal(mean, std)) -> draw one sample outside the kernel.
    # TODO(synk): pyro.module / trace-side-effect registration has no Pallas equivalent.
    z = mean + std * jax.random.normal(zkey, (), jnp.float32)
    jax.block_until_ready(z)

    mean_ref, std_ref = guide_forward_ref(x1, x2, params)
    assert np.allclose(np.asarray(mean), np.asarray(mean_ref)[0], rtol=1e-5, atol=1e-5)
    assert np.allclose(np.asarray(std), np.asarray(std_ref)[0], rtol=1e-5, atol=1e-5)

    # --- small batch of observation pairs (single grid step) ---
    batch_obs = jax.random.normal(bkey, (8, 2), jnp.float32)
    bmean, bstd = guide_forward(batch_obs[:, 0], batch_obs[:, 1], packed)
    bmean, bstd = jax.block_until_ready((bmean, bstd))
    bmean_ref, bstd_ref = guide_forward_ref(batch_obs[:, 0], batch_obs[:, 1], params)
    assert np.allclose(np.asarray(bmean), np.asarray(bmean_ref), rtol=1e-5, atol=1e-5)
    assert np.allclose(np.asarray(bstd), np.asarray(bstd_ref), rtol=1e-5, atol=1e-5)

    # --- larger batch to exercise the grid (>1 step) and batch padding ---
    big_obs = jax.random.normal(gkey, (260, 2), jnp.float32)
    gmean, gstd = guide_forward(big_obs[:, 0], big_obs[:, 1], packed)
    gmean, gstd = jax.block_until_ready((gmean, gstd))
    gmean_ref, gstd_ref = guide_forward_ref(big_obs[:, 0], big_obs[:, 1], params)
    assert np.allclose(np.asarray(gmean), np.asarray(gmean_ref), rtol=1e-5, atol=1e-5)
    assert np.allclose(np.asarray(gstd), np.asarray(gstd_ref), rtol=1e-5, atol=1e-5)

    print("KERNEL_OK")
</pallas_src>

<mosaic_0001>
module attributes {stable_mosaic.version = 11 : i64} {
  func.func @_mlp_kernel(%arg0: i32, %arg1: memref<8x32xf32, #tpu.memory_space<vmem>>, %arg2: memref<5x32x32xf32, #tpu.memory_space<vmem>>, %arg3: memref<8x32xf32, #tpu.memory_space<vmem>>, %arg4: memref<8x32xf32, #tpu.memory_space<vmem>>) attributes {dimension_semantics = [#tpu.dimension_semantics<parallel>], iteration_bounds = array<i64: 1>, scalar_prefetch = 0 : i64, scratch_operands = 0 : i64, tpu.core_type = #tpu.core_type<tc>, window_params = [{transform_indices = @transform_0, window_bounds = array<i64: 8, 32>}, {pipeline_mode = #tpu.pipeline_mode<synchronous>, transform_indices = @transform_1, window_bounds = array<i64: 5, 32, 32>}, {pipeline_mode = #tpu.pipeline_mode<synchronous>, transform_indices = @transform_2, window_bounds = array<i64: 8, 32>}, {transform_indices = @transform_3, window_bounds = array<i64: 8, 32>}]} {
    %c0 = arith.constant 0 : index
    %c0_0 = arith.constant 0 : index
    %0 = vector.load %arg1[%c0, %c0_0] : memref<8x32xf32, #tpu.memory_space<vmem>>, vector<8x32xf32>
    %c0_1 = arith.constant 0 : index
    %c0_2 = arith.constant 0 : index
    %c0_3 = arith.constant 0 : index
    %1 = vector.load %arg2[%c0_1, %c0_2, %c0_3] : memref<5x32x32xf32, #tpu.memory_space<vmem>>, vector<1x32x32xf32>
    %2 = vector.shape_cast %1 : vector<1x32x32xf32> to vector<32x32xf32>
    %cst = arith.constant dense<0.000000e+00> : vector<8x32xf32>
    %3 = tpu.matmul %0, %2, %cst {dimension_numbers = #tpu.dot_dimension_numbers<[1], [0], [0], [1], [0, 0, 1, 1], [], []>} : vector<8x32xf32>, vector<32x32xf32>, vector<8x32xf32> -> vector<8x32xf32>
    %c0_4 = arith.constant 0 : index
    %c0_5 = arith.constant 0 : index
    %4 = vector.load %arg3[%c0_4, %c0_5] : memref<8x32xf32, #tpu.memory_space<vmem>>, vector<1x32xf32>
    %5 = vector.broadcast %4 : vector<1x32xf32> to vector<8x32xf32>
    %6 = arith.addf %3, %5 : vector<8x32xf32>
    %cst_6 = arith.constant 0.000000e+00 : f32
    %7 = vector.broadcast %cst_6 : f32 to vector<8x32xf32>
    %8 = arith.maximumf %6, %7 : vector<8x32xf32>
    %c1 = arith.constant 1 : index
    %c0_7 = arith.constant 0 : index
    %c0_8 = arith.constant 0 : index
    %9 = vector.load %arg2[%c1, %c0_7, %c0_8] : memref<5x32x32xf32, #tpu.memory_space<vmem>>, vector<1x32x32xf32>
    %10 = vector.shape_cast %9 : vector<1x32x32xf32> to vector<32x32xf32>
    %cst_9 = arith.constant dense<0.000000e+00> : vector<8x32xf32>
    %11 = tpu.matmul %8, %10, %cst_9 {dimension_numbers = #tpu.dot_dimension_numbers<[1], [0], [0], [1], [0, 0, 1, 1], [], []>} : vector<8x32xf32>, vector<32x32xf32>, vector<8x32xf32> -> vector<8x32xf32>
    %c1_10 = arith.constant 1 : index
    %c0_11 = arith.constant 0 : index
    %12 = vector.load %arg3[%c1_10, %c0_11] : memref<8x32xf32, #tpu.memory_space<vmem>>, vector<1x32xf32>
    %13 = vector.broadcast %12 : vector<1x32xf32> to vector<8x32xf32>
    %14 = arith.addf %11, %13 : vector<8x32xf32>
    %cst_12 = arith.constant 0.000000e+00 : f32
    %15 = vector.broadcast %cst_12 : f32 to vector<8x32xf32>
    %16 = arith.maximumf %14, %15 : vector<8x32xf32>
    %c2 = arith.constant 2 : index
    %c0_13 = arith.constant 0 : index
    %c0_14 = arith.constant 0 : index
    %17 = vector.load %arg2[%c2, %c0_13, %c0_14] : memref<5x32x32xf32, #tpu.memory_space<vmem>>, vector<1x32x32xf32>
    %18 = vector.shape_cast %17 : vector<1x32x32xf32> to vector<32x32xf32>
    %cst_15 = arith.constant dense<0.000000e+00> : vector<8x32xf32>
    %19 = tpu.matmul %16, %18, %cst_15 {dimension_numbers = #tpu.dot_dimension_numbers<[1], [0], [0], [1], [0, 0, 1, 1], [], []>} : vector<8x32xf32>, vector<32x32xf32>, vector<8x32xf32> -> vector<8x32xf32>
    %c2_16 = arith.constant 2 : index
    %c0_17 = arith.constant 0 : index
    %20 = vector.load %arg3[%c2_16, %c0_17] : memref<8x32xf32, #tpu.memory_space<vmem>>, vector<1x32xf32>
    %21 = vector.broadcast %20 : vector<1x32xf32> to vector<8x32xf32>
    %22 = arith.addf %19, %21 : vector<8x32xf32>
    %cst_18 = arith.constant 0.000000e+00 : f32
    %23 = vector.broadcast %cst_18 : f32 to vector<8x32xf32>
    %24 = arith.maximumf %22, %23 : vector<8x32xf32>
    %c3 = arith.constant 3 : index
    %c0_19 = arith.constant 0 : index
    %c0_20 = arith.constant 0 : index
    %25 = vector.load %arg2[%c3, %c0_19, %c0_20] : memref<5x32x32xf32, #tpu.memory_space<vmem>>, vector<1x32x32xf32>
    %26 = vector.shape_cast %25 : vector<1x32x32xf32> to vector<32x32xf32>
    %cst_21 = arith.constant dense<0.000000e+00> : vector<8x32xf32>
    %27 = tpu.matmul %24, %26, %cst_21 {dimension_numbers = #tpu.dot_dimension_numbers<[1], [0], [0], [1], [0, 0, 1, 1], [], []>} : vector<8x32xf32>, vector<32x32xf32>, vector<8x32xf32> -> vector<8x32xf32>
    %c3_22 = arith.constant 3 : index
    %c0_23 = arith.constant 0 : index
    %28 = vector.load %arg3[%c3_22, %c0_23] : memref<8x32xf32, #tpu.memory_space<vmem>>, vector<1x32xf32>
    %29 = vector.broadcast %28 : vector<1x32xf32> to vector<8x32xf32>
    %30 = arith.addf %27, %29 : vector<8x32xf32>
    %cst_24 = arith.constant 0.000000e+00 : f32
    %31 = vector.broadcast %cst_24 : f32 to vector<8x32xf32>
    %32 = arith.maximumf %30, %31 : vector<8x32xf32>
    %c4 = arith.constant 4 : index
    %c0_25 = arith.constant 0 : index
    %c0_26 = arith.constant 0 : index
    %33 = vector.load %arg2[%c4, %c0_25, %c0_26] : memref<5x32x32xf32, #tpu.memory_space<vmem>>, vector<1x32x32xf32>
    %34 = vector.shape_cast %33 : vector<1x32x32xf32> to vector<32x32xf32>
    %cst_27 = arith.constant dense<0.000000e+00> : vector<8x32xf32>
    %35 = tpu.matmul %32, %34, %cst_27 {dimension_numbers = #tpu.dot_dimension_numbers<[1], [0], [0], [1], [0, 0, 1, 1], [], []>} : vector<8x32xf32>, vector<32x32xf32>, vector<8x32xf32> -> vector<8x32xf32>
    %c4_28 = arith.constant 4 : index
    %c0_29 = arith.constant 0 : index
    %36 = vector.load %arg3[%c4_28, %c0_29] : memref<8x32xf32, #tpu.memory_space<vmem>>, vector<1x32xf32>
    %37 = vector.broadcast %36 : vector<1x32xf32> to vector<8x32xf32>
    %38 = arith.addf %35, %37 : vector<8x32xf32>
    %39 = vector.extract_strided_slice %38 {offsets = [0, 1], sizes = [8, 1], strides = [1, 1]} : vector<8x32xf32> to vector<8x1xf32>
    %40 = math.exp %39 : vector<8x1xf32>
    %41 = tpu.iota {dimensions = array<i32: 1>} : vector<8x32xi32>
    %c1_i32 = arith.constant 1 : i32
    %42 = vector.broadcast %c1_i32 : i32 to vector<8x32xi32>
    %43 = arith.cmpi eq, %41, %42 : vector<8x32xi32>
    %44 = vector.shape_cast %40 : vector<8x1xf32> to vector<8x1xf32>
    %45 = vector.broadcast %44 : vector<8x1xf32> to vector<8x32xf32>
    %46 = arith.select %43, %45, %38 : vector<8x32xi1>, vector<8x32xf32>
    %c0_30 = arith.constant 0 : index
    %c0_31 = arith.constant 0 : index
    %47 = vector.load %arg4[%c0_30, %c0_31] : memref<8x32xf32, #tpu.memory_space<vmem>>, vector<8x32xf32>
    tpu.vector_store %arg4[%c0_30, %c0_31], %46 {strides = array<i32>} : memref<8x32xf32, #tpu.memory_space<vmem>>, vector<8x32xf32>,
    return
  }
  func.func @transform_0(%arg0: i32) -> (i32, i32) {
    %c0_i32 = arith.constant 0 : i32
    %c0_i32_0 = arith.constant 0 : i32
    return %arg0, %c0_i32 : i32, i32
  }
  func.func @transform_1(%arg0: i32) -> (i32, i32, i32) {
    %c0_i32 = arith.constant 0 : i32
    %c0_i32_0 = arith.constant 0 : i32
    %c0_i32_1 = arith.constant 0 : i32
    %c0_i32_2 = arith.constant 0 : i32
    return %c0_i32, %c0_i32_0, %c0_i32_1 : i32, i32, i32
  }
  func.func @transform_2(%arg0: i32) -> (i32, i32) {
    %c0_i32 = arith.constant 0 : i32
    %c0_i32_0 = arith.constant 0 : i32
    %c0_i32_1 = arith.constant 0 : i32
    return %c0_i32, %c0_i32_0 : i32, i32
  }
  func.func @transform_3(%arg0: i32) -> (i32, i32) {
    %c0_i32 = arith.constant 0 : i32
    %c0_i32_0 = arith.constant 0 : i32
    return %arg0, %c0_i32 : i32, i32
  }
}

</mosaic_0001>

<bundles_post_ra>
// kernel: _guide_impl.1
= control target key start
LH: loop header
LB: loop body
LE: loop exit
PB: predicated region body
PF: predicated region fallthrough
CT: control target
= control target key end

     0   :  { %8 = vsyncpa [#allocation3], 0  ;;  %s586_s12 = smov [#allocation2]   ;;  %s672_s0 = inlined_call_operand.vmem [shape: f32[8,32], index: 0, kind: input, shape index: {}]   ;;  %s673_s1 = inlined_call_operand.hbm [shape: f32[5,32,32], index: 1, kind: input, shape index: {}]   ;;  %s674_s2 = inlined_call_operand.vmem [shape: f32[8,32], index: 2, kind: input, shape index: {}]   ;;  %s675_s3 = inlined_call_operand.vmem [shape: f32[8,32], index: 3, kind: output, shape index: {}]  }
   0x1   :  { %s16_s13 = sshll.u32 %s586_s12, 4  ;;  %s17_s13 = int_to_ptr.vmem [resolvable:$true] %s16_s13 }
   0x2   :  { %s572_s14 = scalar_lea.vmem %s17_s13, 2560  ;;  %p577_p1 = scmp.lt.s32.totalorder %s17_s13, %s17_s13 }
   0x3   :  { %p573_p0 = scmp.ne.s32.totalorder %s17_s13, %s572_s14  ;;  %p578_p2 = scmp.lt.s32.totalorder %s572_s14, %s572_s14 }
   0x5   :  { %p579_p3 = por %p578_p2, %p577_p1 }
   0x7   :  { %p580_p4 = pnand %p579_p3, %p573_p0 }
   0x9   :  { %583 = shalt.err (!%p580_p4)
}
   0xa   :  { %s587_s15 = smov 128   ;;  %s588_s16 = smov 8  }
   0xb   :  { %22 = dma.hbm_to_vmem [thread:$0]  %s673_s1, 2560, %s17_s13, [#allocation3], %s587_s15, %s587_s15, %s588_s16  }
   0xc   :  { %584 = dma.done.wait [#allocation3], 2560  }
   0xd   :  { %585 = vsyncadd [#allocation3], 4294964736  ;;  %v589_v0 = vmov 0.0   ;;  %vm590_vm0 = vmmov 0   ;;  %v32_v1 = vld [vmem:[#allocation2 + $0x18] sm:$0xff]  ;;  %v31_v2 = vld [vmem:[#allocation2 + $0x10] sm:$0xff]  ;;  %v450_v49 = vlaneseq }
   0xe   :  { %500 = vmatprep.subr.mxu0 %v589_v0  ;;  %508 = vmatprep.mubr.msk.f32.mxu0 %vm590_vm0, %v589_v0  ;;  %v117_v3 = vld [vmem:[#allocation2 + $0x38] sm:$0xff]  ;;  %v30_v4 = vld [vmem:[#allocation2 + $0x8] sm:$0xff]  ;;  %v29_v5 = vld [vmem:[#allocation2] sm:$0xff]  ;;  %vm38_vm1 = vcmask 261120   ;;  %v591_v42 = vmov 1  }
   0xf   :  { %511 = vmatprep.subr.mxu1 %v589_v0  ;;  %519 = vmatprep.mubr.msk.f32.mxu1 %vm590_vm0, %v589_v0  ;;  %v28_v6 = vld [vmem:[%s672_s0] sm:$0xff]  ;;  %v116_v7 = vld [vmem:[#allocation2 + $0x30] sm:$0xff]  ;;  %v115_v8 = vld [vmem:[#allocation2 + $0x28] sm:$0xff]  ;;  %v451_v50 = vand.u32 127, %v450_v49 }
  0x10   :  { %501 = vmatpush3.msra.mxu0 %v32_v1  ;;  %512 = vmatpush3.msra.mxu1 %v117_v3  ;;  %v114_v9 = vld [vmem:[#allocation2 + $0x20] sm:$0xff]  ;;  %v201_v10 = vld [vmem:[#allocation2 + $0x58] sm:$0xff]  ;;  %v200_v16 = vld [vmem:[#allocation2 + $0x50] sm:$0xff] }
  0x11   :  { %502 = vmatprep.subr.mxu0 %v589_v0  ;;  %513 = vmatprep.subr.mxu1 %v589_v0  ;;  %v465_v11 = vld [vmem:[%s674_s2] ss:$0 sm:$0xff]  ;;  %v199_v17 = vld [vmem:[#allocation2 + $0x48] sm:$0xff]  ;;  %v285_v19 = vld [vmem:[#allocation2 + $0x78] sm:$0xff]  ;;  %vm452_vm2 = vcmp.eq.s32.totalorder %v451_v50, 1 }
  0x12   :  { %503 = vmatpush3.msra.mxu0 %v31_v2  ;;  %514 = vmatpush3.msra.mxu1 %v116_v7  ;;  %v198_v18 = vld [vmem:[#allocation2 + $0x40] sm:$0xff]  ;;  %v284_v25 = vld [vmem:[#allocation2 + $0x70] sm:$0xff]  ;;  %v283_v26 = vld [vmem:[#allocation2 + $0x68] sm:$0xff] }
  0x13   :  { %504 = vmatprep.subr.mxu0 %v589_v0  ;;  %515 = vmatprep.subr.mxu1 %v589_v0  ;;  %v467_v20 = vld [vmem:[%s674_s2 + $0x1] ss:$0 sm:$0xff]  ;;  %v369_v28 = vld [vmem:[#allocation2 + $0x98] sm:$0xff]  ;;  %v469_v29 = vld [vmem:[%s674_s2 + $0x2] ss:$0 sm:$0xff] }
  0x14   :  { %505 = vmatpush3.msra.mxu0 %v30_v4  ;;  %516 = vmatpush3.msra.mxu1 %v115_v8  ;;  %v282_v27 = vld [vmem:[#allocation2 + $0x60] sm:$0xff]  ;;  %v368_v34 = vld [vmem:[#allocation2 + $0x90] sm:$0xff]  ;;  %v367_v35 = vld [vmem:[#allocation2 + $0x88] sm:$0xff] }
  0x15   :  { %506 = vmatprep.subr.mxu0 %v589_v0  ;;  %517 = vmatprep.subr.mxu1 %v589_v0  ;;  %v366_v36 = vld [vmem:[#allocation2 + $0x80] sm:$0xff] }
  0x16   :  { %507 = vmatpush3.msra.mxu0 %v29_v5  ;;  %518 = vmatpush3.msra.mxu1 %v114_v9  ;;  %v471_v37 = vld [vmem:[%s674_s2 + $0x3] ss:$0 sm:$0xff]  ;;  %v473_v43 = vld [vmem:[%s674_s2 + $0x4] ss:$0 sm:$0xff] }
  0x17   :  { %509 = vmatmul.mubr.msk.f32.vlgmr.msra.gmra.mxu0 %vm38_vm1, %v28_v6  ;;  %522 = vmatprep.subr.mxu0 %v589_v0 }
  0x18   :  { %530 = vmatprep.mubr.msk.f32.mxu0 %vm590_vm0, %v589_v0  ;;  %533 = vmatprep.subr.mxu1 %v589_v0 }
  0x19   :  { %523 = vmatpush3.msra.mxu0 %v201_v10  ;;  %561 = vset.pattern.permute.xlu0 %v591_v42 }
  0x1a   :  { %524 = vmatprep.subr.mxu0 %v589_v0 }
  0x1b   :  { %525 = vmatpush3.msra.mxu0 %v200_v16 }
  0x1c   :  { %526 = vmatprep.subr.mxu0 %v589_v0 }
  0x1d   :  { %527 = vmatpush3.msra.mxu0 %v199_v17 }
  0x1e   :  { %528 = vmatprep.subr.mxu0 %v589_v0 }
  0x1f   :  { %529 = vmatpush3.msra.mxu0 %v198_v18 }
  0x20   :  { %544 = vmatprep.subr.mxu0 %v589_v0 }
  0xd7   :  { %v108_v12 = vpop.f32.mrf.mxu0 }
  0xd8   :  { %v109_v13 = vadd.f32 %v465_v11, %v108_v12 }
  0xd9   :  { %v510_v14 = vpop.f32.mrf.mxu0 }
  0xda   :  { %v112_v15 = vmax.f32 %v109_v13, 0.0 }
  0xdc   :  { %520 = vmatmul.mubr.msk.f32.vlgmr.msra.gmra.mxu1 %vm38_vm1, %v112_v15 }
  0xdd   :  { %541 = vmatprep.mubr.msk.f32.mxu1 %vm590_vm0, %v589_v0  ;;  %534 = vmatpush3.msra.mxu1 %v285_v19 }
  0xde   :  { %535 = vmatprep.subr.mxu1 %v589_v0 }
  0xdf   :  { %536 = vmatpush3.msra.mxu1 %v284_v25 }
  0xe0   :  { %537 = vmatprep.subr.mxu1 %v589_v0 }
  0xe1   :  { %538 = vmatpush3.msra.mxu1 %v283_v26 }
  0xe2   :  { %539 = vmatprep.subr.mxu1 %v589_v0 }
  0xe3   :  { %540 = vmatpush3.msra.mxu1 %v282_v27 }
 0x19c   :  { %v192_v21 = vpop.f32.mrf.mxu1 }
 0x19d   :  { %v193_v22 = vadd.f32 %v467_v20, %v192_v21 }
 0x19e   :  { %v521_v23 = vpop.f32.mrf.mxu1 }
 0x19f   :  { %v196_v24 = vmax.f32 %v193_v22, 0.0 }
 0x1a1   :  { %531 = vmatmul.mubr.msk.f32.vlgmr.msra.gmra.mxu0 %vm38_vm1, %v196_v24 }
 0x1a2   :  { %552 = vmatprep.mubr.msk.f32.mxu0 %vm590_vm0, %v589_v0  ;;  %545 = vmatpush3.msra.mxu0 %v369_v28 }
 0x1a3   :  { %546 = vmatprep.subr.mxu0 %v589_v0 }
 0x1a4   :  { %547 = vmatpush3.msra.mxu0 %v368_v34 }
 0x1a5   :  { %548 = vmatprep.subr.mxu0 %v589_v0 }
 0x1a6   :  { %549 = vmatpush3.msra.mxu0 %v367_v35 }
 0x1a7   :  { %550 = vmatprep.subr.mxu0 %v589_v0 }
 0x1a8   :  { %551 = vmatpush3.msra.mxu0 %v366_v36 }
 0x261   :  { %v276_v30 = vpop.f32.mrf.mxu0 }
 0x262   :  { %v277_v31 = vadd.f32 %v469_v29, %v276_v30 }
 0x263   :  { %v532_v32 = vpop.f32.mrf.mxu0 }
 0x264   :  { %v280_v33 = vmax.f32 %v277_v31, 0.0 }
 0x266   :  { %542 = vmatmul.mubr.msk.f32.vlgmr.msra.gmra.mxu1 %vm38_vm1, %v280_v33 }
 0x326   :  { %v360_v38 = vpop.f32.mrf.mxu1 }
 0x327   :  { %v361_v39 = vadd.f32 %v471_v37, %v360_v38 }
 0x328   :  { %v543_v40 = vpop.f32.mrf.mxu1 }
 0x329   :  { %v364_v41 = vmax.f32 %v361_v39, 0.0 }
 0x32b   :  { %553 = vmatmul.mubr.msk.f32.vlgmr.msra.gmra.mxu0 %vm38_vm1, %v364_v41 }
 0x3eb   :  { %v444_v44 = vpop.f32.mrf.mxu0 }
 0x3ec   :  { %v445_v45 = vadd.f32 %v473_v43, %v444_v44 }
 0x3ed   :  { %v554_v46 = vpop.f32.mrf.mxu0 }
 0x3ee   :  { %v448_v47 = vmul.f32 1.442695, %v445_v45 }
 0x3f0   :  { %562 = vpow2.f32 %v448_v47 }
 0x3fd   :  { %v563_v48 = vpop.eup %562 }
 0x3fe   :  { %455 = vperm.xlu0 %561, %v563_v48  }
 0x479   :  { %v456_v51 = vpop.permute.xlu0 %455 }
 0x47a   :  { %v458_v52 = vsel %vm452_vm2, %v456_v51, %v445_v45 }
 0x47b   :  { %459 = vst.msk [vmem:[%s675_s3] sm:$0xff] %vm38_vm1, %v458_v52 }
 0x47c   :  { %464 = vsyncpa [#allocation3], 1 }

</bundles_post_ra>
